<compile_context>
chip_gen: v7x
topology: tpu7x:2x2x1
jax: 0.10.0
libtpu: 0.0.40
codegen_flags: <defaults>
</compile_context>

<pallas_src>
import jax
import jax.numpy as jnp
from jax import lax
from jax.experimental import pallas as pl
from jax.experimental.pallas import tpu as pltpu

STATE_DIM = 3      # Pendulum-v1 observation dim
HIDDEN_DIM = 128
ACTION_DIM = 1     # Pendulum-v1 action dim
_LANE = 128


def _round_up(n, m):
    return ((n + m - 1) // m) * m


def _policy_kernel(xT_ref, w1T_ref, b1T_ref, whT_ref, bhT_ref, out_ref):
    # fc1 on the MXU: (HIDDEN, S) @ (S, TILE) -> hT (HIDDEN, TILE); bias+relu on VPU.
    hT = jnp.dot(w1T_ref[...], xT_ref[...], preferred_element_type=jnp.float32)
    hT = jnp.maximum(hT + b1T_ref[...], 0.0)

    # Fused mu/std heads on the MXU: (2A, HIDDEN) @ (HIDDEN, TILE) -> (2A, TILE).
    headsT = (jnp.dot(whT_ref[...], hT, preferred_element_type=jnp.float32)
              + bhT_ref[...])

    # Rows 0..A-1 -> mu = 2*tanh ; rows A..2A-1 -> std = softplus (stable form).
    # With 2A = 2 both branches live on the same vregs, so the select is free.
    mu_part = 2.0 * jnp.tanh(headsT)
    std_part = jnp.maximum(headsT, 0.0) + jnp.log1p(jnp.exp(-jnp.abs(headsT)))
    row = lax.broadcasted_iota(jnp.int32, headsT.shape, 0)
    out_ref[...] = jnp.where(row < ACTION_DIM, mu_part, std_part)


def policy_net_continuous(x, params, tile_b=4096):
    """x: (B, STATE_DIM) float32. params: dict of weights/biases.
    Returns (mu, std), each (B, ACTION_DIM) float32."""
    B = x.shape[0]
    A = ACTION_DIM

    # Fuse + transpose params in the wrapper (cheap one-off XLA layout plumbing).
    w1T = params["w1"].T                                                 # (H, S)
    b1T = params["b1"].T                                                 # (H, 1)
    whT = jnp.concatenate([params["wmu"], params["wstd"]], axis=1).T     # (2A, H)
    bhT = jnp.concatenate([params["bmu"], params["bstd"]], axis=1).T     # (2A, 1)

    # Batch lives in lanes: pick a lane-multiple tile, pad B up to it.
    b_ru = _round_up(B, _LANE)
    tile = min(_round_up(max(tile_b, _LANE), _LANE), b_ru)
    if b_ru >= 2 * _LANE:
        # Guarantee >= 2 grid steps for large batches so the "parallel" batch
        # axis can use both TensorCores on v7x (harmless on 1-TC v5e/v6e).
        tile = min(tile, (b_ru // 2) // _LANE * _LANE)
    tile = max(tile, _LANE)
    b_pad = _round_up(B, tile)
    grid = (b_pad // tile,)

    xT = jnp.pad(x, ((0, b_pad - B), (0, 0))).T                          # (S, b_pad)

    const = lambda i: (0, 0)   # weights/biases stay VMEM-resident across steps

    cost = pl.CostEstimate(
        flops=2 * b_pad * (STATE_DIM * HIDDEN_DIM + HIDDEN_DIM * 2 * A),
        transcendentals=3 * 2 * A * b_pad,
        bytes_accessed=4 * (b_pad * (STATE_DIM + 2 * A)
                            + STATE_DIM * HIDDEN_DIM + HIDDEN_DIM * 2 * A
                            + HIDDEN_DIM + 2 * A),
    )

    out = pl.pallas_call(
        _policy_kernel,
        out_shape=jax.ShapeDtypeStruct((2 * A, b_pad), jnp.float32),
        grid_spec=pltpu.PrefetchScalarGridSpec(
            num_scalar_prefetch=0,
            grid=grid,
            in_specs=[
                pl.BlockSpec((STATE_DIM, tile), lambda i: (0, i)),        # x.T tile
                pl.BlockSpec((HIDDEN_DIM, STATE_DIM), const),             # w1.T
                pl.BlockSpec((HIDDEN_DIM, 1), const),                     # b1.T
                pl.BlockSpec((2 * A, HIDDEN_DIM), const),                 # fused head W.T
                pl.BlockSpec((2 * A, 1), const),                          # fused head b.T
            ],
            out_specs=pl.BlockSpec((2 * A, tile), lambda i: (0, i)),
        ),
        compiler_params=pltpu.CompilerParams(
            dimension_semantics=("parallel",),
        ),
        cost_estimate=cost,
    )(xT, w1T, b1T, whT, bhT)

    # Split the fused heads by row and restore the (B, A) layout.
    mu = out[:A, :B].T
    std = out[A:, :B].T
    return mu, std


def init_params(key):
    """Deterministic init mimicking torch.nn.Linear default (U[-1/sqrt(fan_in), +])."""
    ks = jax.random.split(key, 6)

    def lin(kw, kb, fan_in, fan_out):
        bound = 1.0 / jnp.sqrt(fan_in)
        w = jax.random.uniform(kw, (fan_in, fan_out), jnp.float32, -bound, bound)
        b = jax.random.uniform(kb, (1, fan_out), jnp.float32, -bound, bound)
        return w, b

    w1, b1 = lin(ks[0], ks[1], STATE_DIM, HIDDEN_DIM)
    wmu, bmu = lin(ks[2], ks[3], HIDDEN_DIM, ACTION_DIM)
    wstd, bstd = lin(ks[4], ks[5], HIDDEN_DIM, ACTION_DIM)
    return dict(w1=w1, b1=b1, wmu=wmu, bmu=bmu, wstd=wstd, bstd=bstd)


def _reference(x, p):
    h = jax.nn.relu(x @ p["w1"] + p["b1"])
    mu = 2.0 * jnp.tanh(h @ p["wmu"] + p["bmu"])
    std = jax.nn.softplus(h @ p["wstd"] + p["bstd"])
    return mu, std


if __name__ == "__main__":
    key = jax.random.PRNGKey(0)
    k_x1, k_x2, k_x3, k_p = jax.random.split(key, 4)
    params = init_params(k_p)

    fn = jax.jit(policy_net_continuous, static_argnames=("tile_b",))

    # Small batch (single grid step, heavy lane padding).
    B1 = 8
    x1 = jax.random.normal(k_x1, (B1, STATE_DIM), jnp.float32)
    mu1, std1 = fn(x1, params)
    jax.block_until_ready((mu1, std1))
    mu1_ref, std1_ref = _reference(x1, params)
    assert mu1.shape == (B1, ACTION_DIM) and std1.shape == (B1, ACTION_DIM)
    assert jnp.allclose(mu1, mu1_ref, atol=1e-5, rtol=1e-5)
    assert jnp.allclose(std1, std1_ref, atol=1e-5, rtol=1e-5)

    # Ragged small batch with a tiny requested tile (clamped up to one lane tile).
    B2 = 20
    x2 = jax.random.normal(k_x2, (B2, STATE_DIM), jnp.float32)
    mu2, std2 = fn(x2, params, tile_b=8)
    jax.block_until_ready((mu2, std2))
    mu2_ref, std2_ref = _reference(x2, params)
    assert mu2.shape == (B2, ACTION_DIM) and std2.shape == (B2, ACTION_DIM)
    assert jnp.allclose(mu2, mu2_ref, atol=1e-5, rtol=1e-5)
    assert jnp.allclose(std2, std2_ref, atol=1e-5, rtol=1e-5)

    # Larger batch: exercises the >=2-grid-step cap (tile=256, grid=(2,)).
    B3 = 512
    x3 = jax.random.normal(k_x3, (B3, STATE_DIM), jnp.float32)
    mu3, std3 = fn(x3, params)
    jax.block_until_ready((mu3, std3))
    mu3_ref, std3_ref = _reference(x3, params)
    assert mu3.shape == (B3, ACTION_DIM) and std3.shape == (B3, ACTION_DIM)
    assert jnp.allclose(mu3, mu3_ref, atol=1e-5, rtol=1e-5)
    assert jnp.allclose(std3, std3_ref, atol=1e-5, rtol=1e-5)

    print("KERNEL_OK")
</pallas_src>

<mosaic_0001>
module attributes {stable_mosaic.version = 11 : i64} {
  func.func @_policy_kernel(%arg0: i32, %arg1: memref<3x128xf32, #tpu.memory_space<vmem>>, %arg2: memref<128x3xf32, #tpu.memory_space<vmem>>, %arg3: memref<128x1xf32, #tpu.memory_space<vmem>>, %arg4: memref<2x128xf32, #tpu.memory_space<vmem>>, %arg5: memref<2x1xf32, #tpu.memory_space<vmem>>, %arg6: memref<2x128xf32, #tpu.memory_space<vmem>>) attributes {dimension_semantics = [#tpu.dimension_semantics<parallel>], iteration_bounds = array<i64: 1>, scalar_prefetch = 0 : i64, scratch_operands = 0 : i64, tpu.core_type = #tpu.core_type<tc>, window_params = [{transform_indices = @transform_0, window_bounds = array<i64: 3, 128>}, {pipeline_mode = #tpu.pipeline_mode<synchronous>, transform_indices = @transform_1, window_bounds = array<i64: 128, 3>}, {pipeline_mode = #tpu.pipeline_mode<synchronous>, transform_indices = @transform_2, window_bounds = array<i64: 128, 1>}, {pipeline_mode = #tpu.pipeline_mode<synchronous>, transform_indices = @transform_3, window_bounds = array<i64: 2, 128>}, {pipeline_mode = #tpu.pipeline_mode<synchronous>, transform_indices = @transform_4, window_bounds = array<i64: 2, 1>}, {transform_indices = @transform_5, window_bounds = array<i64: 2, 128>}]} {
    %c0 = arith.constant 0 : index
    %c0_0 = arith.constant 0 : index
    %0 = vector.load %arg2[%c0, %c0_0] : memref<128x3xf32, #tpu.memory_space<vmem>>, vector<128x3xf32>
    %c0_1 = arith.constant 0 : index
    %c0_2 = arith.constant 0 : index
    %1 = vector.load %arg1[%c0_1, %c0_2] : memref<3x128xf32, #tpu.memory_space<vmem>>, vector<3x128xf32>
    %cst = arith.constant dense<0.000000e+00> : vector<128x128xf32>
    %2 = tpu.matmul %0, %1, %cst {dimension_numbers = #tpu.dot_dimension_numbers<[1], [0], [0], [1], [0, 0, 1, 1], [], []>} : vector<128x3xf32>, vector<3x128xf32>, vector<128x128xf32> -> vector<128x128xf32>
    %c0_3 = arith.constant 0 : index
    %c0_4 = arith.constant 0 : index
    %3 = vector.load %arg3[%c0_3, %c0_4] : memref<128x1xf32, #tpu.memory_space<vmem>>, vector<128x1xf32>
    %4 = vector.broadcast %3 : vector<128x1xf32> to vector<128x128xf32>
    %5 = arith.addf %2, %4 : vector<128x128xf32>
    %cst_5 = arith.constant 0.000000e+00 : f32
    %6 = vector.broadcast %cst_5 : f32 to vector<128x128xf32>
    %7 = arith.maximumf %5, %6 : vector<128x128xf32>
    %c0_6 = arith.constant 0 : index
    %c0_7 = arith.constant 0 : index
    %8 = vector.load %arg4[%c0_6, %c0_7] : memref<2x128xf32, #tpu.memory_space<vmem>>, vector<2x128xf32>
    %cst_8 = arith.constant dense<0.000000e+00> : vector<2x128xf32>
    %9 = tpu.matmul %8, %7, %cst_8 {dimension_numbers = #tpu.dot_dimension_numbers<[1], [0], [0], [1], [0, 0, 1, 1], [], []>} : vector<2x128xf32>, vector<128x128xf32>, vector<2x128xf32> -> vector<2x128xf32>
    %c0_9 = arith.constant 0 : index
    %c0_10 = arith.constant 0 : index
    %10 = vector.load %arg5[%c0_9, %c0_10] : memref<2x1xf32, #tpu.memory_space<vmem>>, vector<2x1xf32>
    %11 = vector.broadcast %10 : vector<2x1xf32> to vector<2x128xf32>
    %12 = arith.addf %9, %11 : vector<2x128xf32>
    %13 = math.tanh %12 : vector<2x128xf32>
    %cst_11 = arith.constant 2.000000e+00 : f32
    %14 = vector.broadcast %cst_11 : f32 to vector<2x128xf32>
    %15 = arith.mulf %14, %13 : vector<2x128xf32>
    %cst_12 = arith.constant 0.000000e+00 : f32
    %16 = vector.broadcast %cst_12 : f32 to vector<2x128xf32>
    %17 = arith.maximumf %12, %16 : vector<2x128xf32>
    %18 = math.absf %12 : vector<2x128xf32>
    %cst_13 = arith.constant 0.000000e+00 : f32
    %19 = vector.broadcast %cst_13 : f32 to vector<2x128xf32>
    %20 = arith.subf %19, %18 : vector<2x128xf32>
    %21 = math.exp %20 : vector<2x128xf32>
    %22 = math.log1p %21 : vector<2x128xf32>
    %23 = arith.addf %17, %22 : vector<2x128xf32>
    %24 = tpu.iota {dimensions = array<i32: 0>} : vector<2x128xi32>
    %c1_i32 = arith.constant 1 : i32
    %25 = vector.broadcast %c1_i32 : i32 to vector<2x128xi32>
    %26 = arith.cmpi slt, %24, %25 : vector<2x128xi32>
    %27 = arith.select %26, %15, %23 : vector<2x128xi1>, vector<2x128xf32>
    %c0_14 = arith.constant 0 : index
    %c0_15 = arith.constant 0 : index
    %28 = vector.load %arg6[%c0_14, %c0_15] : memref<2x128xf32, #tpu.memory_space<vmem>>, vector<2x128xf32>
    tpu.vector_store %arg6[%c0_14, %c0_15], %27 {strides = array<i32>} : memref<2x128xf32, #tpu.memory_space<vmem>>, vector<2x128xf32>,
    return
  }
  func.func @transform_0(%arg0: i32) -> (i32, i32) {
    %c0_i32 = arith.constant 0 : i32
    %c0_i32_0 = arith.constant 0 : i32
    return %c0_i32, %arg0 : i32, i32
  }
  func.func @transform_1(%arg0: i32) -> (i32, i32) {
    %c0_i32 = arith.constant 0 : i32
    %c0_i32_0 = arith.constant 0 : i32
    %c0_i32_1 = arith.constant 0 : i32
    return %c0_i32, %c0_i32_0 : i32, i32
  }
  func.func @transform_2(%arg0: i32) -> (i32, i32) {
    %c0_i32 = arith.constant 0 : i32
    %c0_i32_0 = arith.constant 0 : i32
    %c0_i32_1 = arith.constant 0 : i32
    return %c0_i32, %c0_i32_0 : i32, i32
  }
  func.func @transform_3(%arg0: i32) -> (i32, i32) {
    %c0_i32 = arith.constant 0 : i32
    %c0_i32_0 = arith.constant 0 : i32
    %c0_i32_1 = arith.constant 0 : i32
    return %c0_i32, %c0_i32_0 : i32, i32
  }
  func.func @transform_4(%arg0: i32) -> (i32, i32) {
    %c0_i32 = arith.constant 0 : i32
    %c0_i32_0 = arith.constant 0 : i32
    %c0_i32_1 = arith.constant 0 : i32
    return %c0_i32, %c0_i32_0 : i32, i32
  }
  func.func @transform_5(%arg0: i32) -> (i32, i32) {
    %c0_i32 = arith.constant 0 : i32
    %c0_i32_0 = arith.constant 0 : i32
    return %c0_i32, %arg0 : i32, i32
  }
}

</mosaic_0001>

<bundles_post_ra>
// kernel: policy_net_continuous.1
= control target key start
LH: loop header
LB: loop body
LE: loop exit
PB: predicated region body
PF: predicated region fallthrough
CT: control target
= control target key end

     0   :  { %vm182_vm0 = vcmask 1042432   ;;  %vm133_vm1 = vcmask 23552   ;;  %v598_v3 = vmov 0   ;;  %v599_v35 = vmov 0.0|0.0   ;;  %s764_s0 = inlined_call_operand.vmem [shape: f32[3,128], index: 0, kind: input, shape index: {}]   ;;  %s765_s1 = inlined_call_operand.vmem [shape: f32[128,3], index: 1, kind: input, shape index: {}]   ;;  %s766_s2 = inlined_call_operand.vmem [shape: f32[128,1], index: 2, kind: input, shape index: {}]   ;;  %s767_s4 = inlined_call_operand.vmem [shape: f32[2,1], index: 4, kind: input, shape index: {}]   ;;  %s768_s3 = inlined_call_operand.vmem [shape: f32[2,128], index: 3, kind: input, shape index: {}]   ;;  %s769_s5 = inlined_call_operand.vmem [shape: f32[2,128], index: 5, kind: output, shape index: {}]  }
   0x1   :  { %v36_v0 = vld [vmem:[%s764_s0] sm:$0x7]  ;;  %v21_v2 = vld [vmem:[%s765_s1 + $0x8] sm:$0xff]  ;;  %590 = vset.pattern.permute.xlu0 %v598_v3  ;;  %591 = vset.pattern.permute.xlu1 %v598_v3  ;;  %v22_v4 = vld [vmem:[%s765_s1 + $0x10] sm:$0xff]  ;;  %vm600_vm2 = vmmov 0   ;;  %v601_v36 = vmov 0.0  }
   0x2   :  { %v20_v1 = vld [vmem:[%s765_s1] sm:$0xff]  ;;  %501 = vmatprep.subr.msk.mxu0 %vm182_vm0, %v36_v0  ;;  %v23_v5 = vld [vmem:[%s765_s1 + $0x18] sm:$0xff]  ;;  %v39_v8 = vld [vmem:[%s766_s2 + $0x10] sm:$0xff]  ;;  %562 = vmatprep.subr.bf16.mxu1 %v599_v35 }
   0x3   :  { %503 = vmatprep.mubr.msk.f32.mxu0 %vm133_vm1, %v20_v1  ;;  %502 = vmatpush3.msk.msra.mxu0 %vm182_vm0, %v36_v0  ;;  %v24_v6 = vld [vmem:[%s765_s1 + $0x20] sm:$0xff]  ;;  %v38_v9 = vld [vmem:[%s766_s2 + $0x8] sm:$0xff]  ;;  %v40_v11 = vld [vmem:[%s766_s2 + $0x18] sm:$0xff] }
   0x4   :  { %504 = vmatmul.mubr.msk.f32.vlgmr.msra.gmra.mrb[0].mxu0 %vm133_vm1, %v21_v2  ;;  %v37_v7 = vld [vmem:[%s766_s2] sm:$0xff]  ;;  %65 = vperm.xlu1 %591, %v39_v8   ;;  %v25_v10 = vld [vmem:[%s765_s1 + $0x28] sm:$0xff]  ;;  %v26_v12 = vld [vmem:[%s765_s1 + $0x30] sm:$0xff] }
   0x5   :  { %506 = vmatprep.mubr.msk.f32.mxu0 %vm133_vm1, %v22_v4  ;;  %55 = vperm.xlu0 %590, %v37_v7   ;;  %v41_v13 = vld [vmem:[%s766_s2 + $0x20] sm:$0xff]  ;;  %v27_v14 = vld [vmem:[%s765_s1 + $0x38] sm:$0xff]  ;;  %v42_v15 = vld [vmem:[%s766_s2 + $0x28] sm:$0xff] }
   0x6   :  { %v28_v16 = vld [vmem:[%s765_s1 + $0x40] sm:$0xff]  ;;  %v43_v17 = vld [vmem:[%s766_s2 + $0x30] sm:$0xff]  ;;  %v29_v18 = vld [vmem:[%s765_s1 + $0x48] sm:$0xff]  ;;  %559 = vmatprep.mubr.msk.f32.mxu1 %vm600_vm2, %v601_v36 }
   0x7   :  { %v44_v19 = vld [vmem:[%s766_s2 + $0x38] sm:$0xff]  ;;  %v30_v20 = vld [vmem:[%s765_s1 + $0x50] sm:$0xff]  ;;  %v45_v21 = vld [vmem:[%s766_s2 + $0x40] sm:$0xff] }
   0x8   :  { %507 = vmatmul.mubr.msk.f32.gmra.mrb[2].mxu0 %vm133_vm1, %v23_v5  ;;  %70 = vperm.xlu1 %591, %v40_v11   ;;  %v31_v22 = vld [vmem:[%s765_s1 + $0x58] sm:$0xff]  ;;  %v46_v23 = vld [vmem:[%s766_s2 + $0x48] sm:$0xff]  ;;  %v32_v24 = vld [vmem:[%s765_s1 + $0x60] sm:$0xff] }
   0x9   :  { %509 = vmatprep.mubr.msk.f32.mxu0 %vm133_vm1, %v24_v6  ;;  %60 = vperm.xlu0 %590, %v38_v9   ;;  %v47_v25 = vld [vmem:[%s766_s2 + $0x50] sm:$0xff]  ;;  %v33_v26 = vld [vmem:[%s765_s1 + $0x68] sm:$0xff]  ;;  %v48_v27 = vld [vmem:[%s766_s2 + $0x58] sm:$0xff] }
   0xa   :  { %v34_v28 = vld [vmem:[%s765_s1 + $0x70] sm:$0xff]  ;;  %v49_v29 = vld [vmem:[%s766_s2 + $0x60] sm:$0xff]  ;;  %v35_v30 = vld [vmem:[%s765_s1 + $0x78] sm:$0xff] }
   0xb   :  { %v50_v31 = vld [vmem:[%s766_s2 + $0x68] sm:$0xff]  ;;  %v51_v32 = vld [vmem:[%s766_s2 + $0x70] sm:$0xff]  ;;  %v52_v33 = vld [vmem:[%s766_s2 + $0x78] sm:$0xff] }
   0xc   :  { %510 = vmatmul.mubr.msk.f32.gmra.mrb[4].mxu0 %vm133_vm1, %v25_v10  ;;  %80 = vperm.xlu1 %591, %v42_v15   ;;  %v348_v34 = vld [vmem:[%s767_s4] sm:$0x3] }
   0xd   :  { %512 = vmatprep.mubr.msk.f32.mxu0 %vm133_vm1, %v26_v12  ;;  %75 = vperm.xlu0 %590, %v41_v13  }
  0x10   :  { %513 = vmatmul.mubr.msk.f32.gmra.mrb[6].mxu0 %vm133_vm1, %v27_v14  ;;  %90 = vperm.xlu1 %591, %v44_v19  }
  0x11   :  { %515 = vmatprep.mubr.msk.f32.mxu0 %vm133_vm1, %v28_v16  ;;  %85 = vperm.xlu0 %590, %v43_v17  }
  0x14   :  { %516 = vmatmul.mubr.msk.f32.gmra.mrb[8].mxu0 %vm133_vm1, %v29_v18  ;;  %100 = vperm.xlu1 %591, %v46_v23  }
  0x15   :  { %518 = vmatprep.mubr.msk.f32.mxu0 %vm133_vm1, %v30_v20  ;;  %95 = vperm.xlu0 %590, %v45_v21  }
  0x18   :  { %519 = vmatmul.mubr.msk.f32.gmra.mrb[10].mxu0 %vm133_vm1, %v31_v22  ;;  %110 = vperm.xlu1 %591, %v48_v27  }
  0x19   :  { %521 = vmatprep.mubr.msk.f32.mxu0 %vm133_vm1, %v32_v24  ;;  %105 = vperm.xlu0 %590, %v47_v25  }
  0x1c   :  { %522 = vmatmul.mubr.msk.f32.gmra.mrb[12].mxu0 %vm133_vm1, %v33_v26  ;;  %120 = vperm.xlu1 %591, %v50_v31  }
  0x1d   :  { %524 = vmatprep.mubr.msk.f32.mxu0 %vm133_vm1, %v34_v28  ;;  %115 = vperm.xlu0 %590, %v49_v29  }
  0x20   :  { %525 = vmatmul.mubr.msk.f32.gmra.mrb[14].mxu0 %vm133_vm1, %v35_v30  ;;  %130 = vperm.xlu1 %591, %v52_v33  }
  0x21   :  { %125 = vperm.xlu0 %590, %v51_v32  }
  0x25   :  { %351 = vperm.xlu0 %590, %v348_v34  }
  0x83   :  { %v66_v37 = vpop.permute.xlu1 %65 }
  0x84   :  { %v56_v38 = vpop.permute.xlu0 %55 }
  0x87   :  { %v71_v39 = vpop.permute.xlu1 %70 }
  0x88   :  { %v61_v40 = vpop.permute.xlu0 %60 }
  0x8b   :  { %v81_v41 = vpop.permute.xlu1 %80 }
  0x8c   :  { %v76_v42 = vpop.permute.xlu0 %75 }
  0x8f   :  { %v91_v48 = vpop.permute.xlu1 %90 }
  0x90   :  { %v86_v51 = vpop.permute.xlu0 %85 }
  0x93   :  { %v101_v61 = vpop.permute.xlu1 %100 }
  0x94   :  { %v96_v0 = vpop.permute.xlu0 %95 }
  0x97   :  { %v111_v9 = vpop.permute.xlu1 %110 }
  0x98   :  { %v106_v12 = vpop.permute.xlu0 %105 }
  0x9b   :  { %v121_v22 = vpop.permute.xlu1 %120 }
  0x9c   :  { %v116_v25 = vpop.permute.xlu0 %115 }
  0x9f   :  { %v131_v34 = vpop.permute.xlu1 %130 }
  0xd7   :  { %v505_v43 = vpop.f32.mrb[0].mxu0 }
  0xd8   :  { %v258_v44 = vadd.f32 %v505_v43, %v61_v40  ;;  %v252_v45 = vpop.f32.mrb[1].mxu0 }
  0xd9   :  { %v253_v46 = vadd.f32 %v252_v45, %v56_v38  ;;  %v126_v38 = vpop.permute.xlu0 %125 }
  0xda   :  { %v332_v47 = vmax.f32 %v258_v44, 0.0 }
  0xdb   :  { %v331_v49 = vmax.f32 %v253_v46, 0.0  ;;  %v508_v50 = vpop.f32.mrb[2].mxu0  ;;  %v347_v46 = vld [vmem:[%s768_s3] sm:$0x3] }
  0xdc   :  { %v268_v52 = vadd.f32 %v508_v50, %v71_v39  ;;  %v262_v53 = vpop.f32.mrb[3].mxu0 }
  0xdd   :  { %v263_v54 = vadd.f32 %v262_v53, %v66_v37  ;;  %v563_v55 = vpack.c.bf16 %v332_v47, %v331_v49  ;;  %v352_v47 = vpop.permute.xlu0 %351 }
  0xde   :  { %v334_v56 = vmax.f32 %v268_v52, 0.0 }
  0xdf   :  { %v333_v57 = vmax.f32 %v263_v54, 0.0  ;;  %v511_v58 = vpop.f32.mrb[4].mxu0  ;;  %564 = vmatpush3.bf16.msra.mxu1 %v563_v55 }
  0xe0   :  { %v278_v59 = vadd.f32 %v511_v58, %v81_v41  ;;  %v272_v60 = vpop.f32.mrb[5].mxu0  ;;  %565 = vmatprep.subr.bf16.mxu1 %v599_v35 }
  0xe1   :  { %v566_v62 = vpack.c.bf16 %v334_v56, %v333_v57  ;;  %v273_v63 = vadd.f32 %v272_v60, %v76_v42  ;;  %v441_v56 = vlaneseq }
  0xe2   :  { %v336_v1 = vmax.f32 %v278_v59, 0.0 }
  0xe3   :  { %v335_v2 = vmax.f32 %v273_v63, 0.0  ;;  %v514_v3 = vpop.f32.mrb[6].mxu0  ;;  %567 = vmatpush3.bf16.msra.mxu1 %v566_v62  ;;  %v442_v59 = vshrl.u32 %v441_v56, 7 }
  0xe4   :  { %v288_v4 = vadd.f32 %v514_v3, %v91_v48  ;;  %v282_v5 = vpop.f32.mrb[7].mxu0  ;;  %568 = vmatprep.subr.bf16.mxu1 %v599_v35 }
  0xe5   :  { %v569_v6 = vpack.c.bf16 %v336_v1, %v335_v2  ;;  %v283_v7 = vadd.f32 %v282_v5, %v86_v51  ;;  %vm443_vm4 = vcmp.lt.s32.totalorder %v442_v59, 1 }
  0xe6   :  { %v338_v8 = vmax.f32 %v288_v4, 0.0 }
  0xe7   :  { %v337_v10 = vmax.f32 %v283_v7, 0.0  ;;  %v517_v11 = vpop.f32.mrb[8].mxu0  ;;  %570 = vmatpush3.bf16.msra.mxu1 %v569_v6 }
  0xe8   :  { %v298_v13 = vadd.f32 %v517_v11, %v101_v61  ;;  %v292_v14 = vpop.f32.mrb[9].mxu0  ;;  %571 = vmatprep.subr.bf16.mxu1 %v599_v35 }
  0xe9   :  { %v572_v15 = vpack.c.bf16 %v338_v8, %v337_v10  ;;  %v293_v16 = vadd.f32 %v292_v14, %v96_v0 }
  0xea   :  { %v340_v17 = vmax.f32 %v298_v13, 0.0 }
  0xeb   :  { %v339_v18 = vmax.f32 %v293_v16, 0.0  ;;  %v520_v19 = vpop.f32.mrb[10].mxu0  ;;  %573 = vmatpush3.bf16.msra.mxu1 %v572_v15 }
  0xec   :  { %v308_v20 = vadd.f32 %v520_v19, %v111_v9  ;;  %v302_v21 = vpop.f32.mrb[11].mxu0  ;;  %574 = vmatprep.subr.bf16.mxu1 %v599_v35 }
  0xed   :  { %v575_v23 = vpack.c.bf16 %v340_v17, %v339_v18  ;;  %v303_v24 = vadd.f32 %v302_v21, %v106_v12 }
  0xee   :  { %v342_v26 = vmax.f32 %v308_v20, 0.0 }
  0xef   :  { %v341_v27 = vmax.f32 %v303_v24, 0.0  ;;  %v523_v28 = vpop.f32.mrb[12].mxu0  ;;  %576 = vmatpush3.bf16.msra.mxu1 %v575_v23 }
  0xf0   :  { %v318_v29 = vadd.f32 %v523_v28, %v121_v22  ;;  %v312_v30 = vpop.f32.mrb[13].mxu0  ;;  %577 = vmatprep.subr.bf16.mxu1 %v599_v35 }
  0xf1   :  { %v578_v31 = vpack.c.bf16 %v342_v26, %v341_v27  ;;  %v313_v32 = vadd.f32 %v312_v30, %v116_v25 }
  0xf2   :  { %v344_v33 = vmax.f32 %v318_v29, 0.0 }
  0xf3   :  { %v343_v36 = vmax.f32 %v313_v32, 0.0  ;;  %v526_v37 = vpop.f32.mrb[14].mxu0  ;;  %579 = vmatpush3.bf16.msra.mxu1 %v578_v31 }
  0xf4   :  { %v328_v39 = vadd.f32 %v526_v37, %v131_v34  ;;  %v322_v40 = vpop.f32.mrb[15].mxu0  ;;  %580 = vmatprep.subr.bf16.mxu1 %v599_v35 }
  0xf5   :  { %v581_v41 = vpack.c.bf16 %v344_v33, %v343_v36  ;;  %v323_v42 = vadd.f32 %v322_v40, %v126_v38 }
  0xf6   :  { %v346_v43 = vmax.f32 %v328_v39, 0.0 }
  0xf7   :  { %v345_v44 = vmax.f32 %v323_v42, 0.0  ;;  %582 = vmatpush3.bf16.msra.mxu1 %v581_v41 }
  0xf8   :  { %583 = vmatprep.subr.bf16.mxu1 %v599_v35 }
  0xf9   :  { %v584_v45 = vpack.c.bf16 %v346_v43, %v345_v44 }
  0xfb   :  { %585 = vmatpush3.bf16.msra.mxu1 %v584_v45 }
  0xfe   :  { %560 = vmatmul.mubr.f32.vlgmr.msra.gmra.mrb[0].mxu1 %v347_v46 }
 0x1d1   :  { %v420_v48 = vpop.f32.mrb[0].mxu1 }
 0x1d2   :  { %v421_v49 = vadd.f32 %v420_v48, %v352_v47  ;;  %v561_v50 = vpop.f32.mrb[1].mxu1 }
 0x1d4   :  { %v427_v51 = vand.u32 2147483647, %v421_v49  ;;  %v426_v0 = vmax.f32 %v421_v49, 0.0 }
 0x1d6   :  { %v428_v52 = vsub.f32 0.0, %v427_v51 }
 0x1d8   :  { %v429_v53 = vmul.f32 1.442695, %v428_v52 }
 0x1da   :  { %592 = vpow2.f32 %v429_v53 }
 0x1e4   :  { %v593_v54 = vpop.eup %592 }
 0x1e5   :  { %v431_v55 = vadd.f32 1.0, %v593_v54  ;;  %v434_v35 = vmul.f32 -0.5, %v593_v54  ;;  %v437_v58 = vand.u32 2147483647, %v593_v54 }
 0x1e7   :  { %594 = vlog2.f32 %v431_v55  ;;  %v435_v57 = vadd.f32 1.0, %v434_v35  ;;  %vm438_vm3 = vcmp.lt.f32.partialorder %v437_v58, 0.0004427343 }
 0x1e8   :  { %596 = vtanh.f32 %v421_v49 }
 0x1e9   :  { %v436_v63 = vmul.f32 %v593_v54, %v435_v57 }
 0x1f1   :  { %v595_v60 = vpop.eup %594 }
 0x1f2   :  { %v597_v61 = vpop.eup %596  ;;  %v433_v62 = vmul.f32 0.6931472, %v595_v60 }
 0x1f3   :  { %v425_v2 = vmul.f32 2.0, %v597_v61 }
 0x1f4   :  { %v439_v1 = vsel %vm438_vm3, %v436_v63, %v433_v62 }
 0x1f5   :  { %v440_v3 = vadd.f32 %v439_v1, %v426_v0 }
 0x1f7   :  { %v444_v4 = vsel %vm443_vm4, %v425_v2, %v440_v3 }
 0x1f8   :  { %445 = vst [vmem:[%s769_s5] sm:$0x3] %v444_v4 }

</bundles_post_ra>
